<compile_context>
chip_gen: v7x
topology: tpu7x:2x2x1
jax: 0.10.0
libtpu: 0.0.40
codegen_flags: <defaults>
</compile_context>

<pallas_src>
import functools

import jax
import jax.numpy as jnp
from jax.experimental import pallas as pl
from jax.experimental.pallas import tpu as pltpu

_LANES = 128
_WIDE = 1024  # lane-dense minor dim for the flattened slab


def _round_up(v: int, m: int) -> int:
    return ((v + m - 1) // m) * m


def _swish_kernel(x_ref, o_ref, *, beta: float, compute_dtype):
    # x_ref / o_ref: (tile_rows, width) VMEM tiles.  beta is a trace-time const.
    x = x_ref[...].astype(compute_dtype)
    b = jnp.asarray(beta, dtype=compute_dtype)
    o_ref[...] = (x * jax.nn.sigmoid(b * x)).astype(o_ref.dtype)


def _swish_jnp(x: jax.Array, beta: float, compute_dtype) -> jax.Array:
    # Plain-JAX path for tiny inputs / ragged tails (fuses for free in XLA).
    xc = x.astype(compute_dtype)
    b = jnp.asarray(beta, dtype=compute_dtype)
    return (xc * jax.nn.sigmoid(b * xc)).astype(x.dtype)


def _device_kind() -> str:
    try:
        return jax.devices()[0].device_kind.lower()
    except Exception:
        return ""


def _compute_dtype(dtype, kind: str):
    # v6e / v7x have bf16 VPU + EUP -> compute natively in bf16 there; f32
    # everywhere else (and always for f32 inputs).
    if dtype == jnp.bfloat16 and ("v6" in kind or "v7" in kind):
        return jnp.bfloat16
    return jnp.float32


def _choose_tile_rows(rows: int, width: int, itemsize: int, kind: str) -> int:
    # ~2 MiB blocks on v5e (16 MiB scoped-VMEM default, slow HBM already
    # amortizes the per-step cost), ~4 MiB on v6e/v7x (faster HBM -> bigger
    # blocks needed to hide the ~0.35 us per-grid-step overhead).
    is_v5e = ("v5e" in kind) or ("v5 lite" in kind) or ("v5litepod" in kind)
    target_bytes = (2 << 20) if is_v5e else (4 << 20)
    tile_rows = max(8, (target_bytes // (width * itemsize)) // 8 * 8)
    if rows <= 16:
        # Tiny slab: one full-extent block (full-dim block shape is always legal).
        return rows
    # Cap so the grid has >= 2 blocks: dimension_semantics=("parallel",) only
    # uses both v7x TensorCores when there is more than one grid step.
    return max(8, min(tile_rows, _round_up(pl.cdiv(rows, 2), 8)))


def swish(x: jax.Array, beta: float = 1.0, donate_input: bool = False) -> jax.Array:
    """Elementwise Swish: x * sigmoid(beta * x) for float inputs of any shape."""
    orig_shape = x.shape
    orig_dtype = x.dtype
    n = x.size
    if n == 0:
        return x

    kind = _device_kind()
    compute_dtype = _compute_dtype(orig_dtype, kind)

    x_flat = jnp.ravel(x)

    # Pick the lane-dense width; inputs too small for a Pallas call just use
    # plain jnp (it fuses into the producer anyway).
    if n >= _WIDE:
        width = _WIDE
    elif n >= _LANES:
        width = _LANES
    else:
        return _swish_jnp(x_flat, beta, compute_dtype).reshape(orig_shape)

    # Kernel covers the leading multiple-of-width elements (no full-tensor
    # pad/slice passes); the tiny tail is handled in plain jnp.
    n_main = (n // width) * width
    tail = n - n_main
    x_main = x_flat if tail == 0 else x_flat[:n_main]
    rows = n_main // width
    x2d = x_main.reshape(rows, width)

    itemsize = x.dtype.itemsize
    tile_rows = _choose_tile_rows(rows, width, itemsize, kind)
    grid = (pl.cdiv(rows, tile_rows),)

    block_bytes = tile_rows * width * itemsize
    # Double-buffered input + output blocks, plus headroom for internal scratch.
    vmem_limit = int(max(16 << 20, 4 * block_bytes + (4 << 20)))

    cost = pl.CostEstimate(
        flops=4 * n_main,
        transcendentals=n_main,
        bytes_accessed=2 * n_main * itemsize,
    )

    extra_kwargs = {}
    if donate_input and tail == 0:
        # Reuse the input HBM buffer for the output (halves footprint).
        extra_kwargs["input_output_aliases"] = {0: 0}

    out2d = pl.pallas_call(
        functools.partial(
            _swish_kernel, beta=float(beta), compute_dtype=compute_dtype
        ),
        out_shape=jax.ShapeDtypeStruct((rows, width), orig_dtype),
        grid=grid,
        in_specs=[pl.BlockSpec((tile_rows, width), lambda i: (i, 0))],
        out_specs=pl.BlockSpec((tile_rows, width), lambda i: (i, 0)),
        compiler_params=pltpu.CompilerParams(
            dimension_semantics=("parallel",),
            vmem_limit_bytes=vmem_limit,
            allow_input_fusion=[True],
        ),
        cost_estimate=cost,
        **extra_kwargs,
    )(x2d)

    out_flat = out2d.reshape(n_main)
    if tail:
        out_tail = _swish_jnp(x_flat[n_main:], beta, compute_dtype)
        out_flat = jnp.concatenate([out_flat, out_tail])
    return out_flat.reshape(orig_shape)


# TODO(synk): Conv2d / BatchNorm2d / MaxPool2d / Linear / Dropout stay as
# standard XLA ops; only the custom Swish activation is a Pallas kernel.


if __name__ == "__main__":
    key = jax.random.PRNGKey(0)
    # NCHW activation, small shapes: batch=2, channels=4, spatial=16x16.
    x = jax.random.normal(key, (2, 4, 16, 16), dtype=jnp.float32)

    beta = 1.0
    out = jax.block_until_ready(swish(x, beta=beta))
    ref = x * jax.nn.sigmoid(beta * x)
    assert out.shape == x.shape and out.dtype == x.dtype
    assert jnp.allclose(out, ref, atol=1e-6, rtol=1e-6)

    # Ragged size (not a multiple of 1024): exercises the kernel + jnp-tail path.
    x2 = jax.random.normal(jax.random.PRNGKey(1), (3, 5, 7, 11), dtype=jnp.float32)
    out2 = jax.block_until_ready(swish(x2, beta=0.7))
    ref2 = x2 * jax.nn.sigmoid(0.7 * x2)
    assert jnp.allclose(out2, ref2, atol=1e-6, rtol=1e-6)

    # bf16 input: native bf16 compute on v6e/v7x, f32 upcast elsewhere.
    x3 = jax.random.normal(jax.random.PRNGKey(2), (2, 8, 8, 8), dtype=jnp.bfloat16)
    out3 = jax.block_until_ready(swish(x3, beta=1.0))
    x3f = x3.astype(jnp.float32)
    ref3 = x3f * jax.nn.sigmoid(x3f)
    assert out3.dtype == jnp.bfloat16
    assert jnp.allclose(out3.astype(jnp.float32), ref3, atol=5e-2, rtol=5e-2)

    # Tiny input (< 128 elements): plain-jnp fallback path.
    x4 = jax.random.normal(jax.random.PRNGKey(3), (2, 3, 4), dtype=jnp.float32)
    out4 = jax.block_until_ready(swish(x4, beta=2.0))
    ref4 = x4 * jax.nn.sigmoid(2.0 * x4)
    assert jnp.allclose(out4, ref4, atol=1e-6, rtol=1e-6)

    print("KERNEL_OK")
</pallas_src>

<mosaic_0001>
module attributes {stable_mosaic.version = 11 : i64} {
  func.func @_swish_kernel(%arg0: i32, %arg1: memref<2x1024xf32, #tpu.memory_space<vmem>>, %arg2: memref<2x1024xf32, #tpu.memory_space<vmem>>) attributes {dimension_semantics = [#tpu.dimension_semantics<parallel>], iteration_bounds = array<i64: 1>, scalar_prefetch = 0 : i64, scratch_operands = 0 : i64, tpu.core_type = #tpu.core_type<tc>, window_params = [{transform_indices = @transform_0, window_bounds = array<i64: 2, 1024>}, {transform_indices = @transform_1, window_bounds = array<i64: 2, 1024>}]} {
    %c0 = arith.constant 0 : index
    %c0_0 = arith.constant 0 : index
    %0 = vector.load %arg1[%c0, %c0_0] : memref<2x1024xf32, #tpu.memory_space<vmem>>, vector<2x1024xf32>
    %cst = arith.constant 1.000000e+00 : f32
    %1 = vector.broadcast %cst : f32 to vector<2x1024xf32>
    %2 = arith.mulf %1, %0 : vector<2x1024xf32>
    %3 = arith.negf %2 : vector<2x1024xf32>
    %4 = math.exp %3 : vector<2x1024xf32>
    %cst_1 = arith.constant 1.000000e+00 : f32
    %5 = vector.broadcast %cst_1 : f32 to vector<2x1024xf32>
    %6 = arith.addf %5, %4 : vector<2x1024xf32>
    %7 = arith.divf %5, %6 : vector<2x1024xf32>
    %8 = arith.mulf %0, %7 : vector<2x1024xf32>
    %c0_2 = arith.constant 0 : index
    %c0_3 = arith.constant 0 : index
    %9 = vector.load %arg2[%c0_2, %c0_3] : memref<2x1024xf32, #tpu.memory_space<vmem>>, vector<2x1024xf32>
    tpu.vector_store %arg2[%c0_2, %c0_3], %8 {strides = array<i32>} : memref<2x1024xf32, #tpu.memory_space<vmem>>, vector<2x1024xf32>,
    return
  }
  func.func @transform_0(%arg0: i32) -> (i32, i32) {
    %c0_i32 = arith.constant 0 : i32
    %c0_i32_0 = arith.constant 0 : i32
    return %arg0, %c0_i32 : i32, i32
  }
  func.func @transform_1(%arg0: i32) -> (i32, i32) {
    %c0_i32 = arith.constant 0 : i32
    %c0_i32_0 = arith.constant 0 : i32
    return %arg0, %c0_i32 : i32, i32
  }
}

</mosaic_0001>

<bundles_post_ra>
// kernel: tpu_custom_call.1
= control target key start
LH: loop header
LB: loop body
LE: loop exit
PB: predicated region body
PF: predicated region fallthrough
CT: control target
= control target key end

     0   :  { %6 = vsyncpa [#allocation3], 0  ;;  %s150_s0 = inlined_call_operand.hbm [shape: f32[2,1024], index: 0, kind: input, shape index: {}]   ;;  %s151_s1 = inlined_call_operand.hbm [shape: f32[2,1024], index: 1, kind: output, shape index: {}]  }
   0x1   :  { %7 = vsyncpa [#allocation4], 0  ;;  %s114_s6 = smov [#allocation2]   ;;  %s66_s10 = scalar_lea.hbm %s150_s0, 256 }
   0x2   :  { %s14_s7 = sshll.u32 %s114_s6, 4  ;;  %p67_p0 = scmp.ne.s32.totalorder %s150_s0, %s66_s10  ;;  %s15_s7 = int_to_ptr.vmem [resolvable:$true] %s14_s7 }
   0x3   :  { %p70_p1 = scmp.lt.u32.totalorder %s66_s10, %s150_s0 }
   0x5   :  { %p72_p2 = pnand %p70_p1, %p67_p0 }
   0x7   :  { %75 = shalt.err (!%p72_p2)
}
   0x8   :  { %s76_s15 = scalar_lea.vmem %s15_s7, 256  ;;  %p81_p4 = scmp.lt.s32.totalorder %s15_s7, %s15_s7 }
   0x9   :  { %p77_p3 = scmp.ne.s32.totalorder %s15_s7, %s76_s15  ;;  %p82_p5 = scmp.lt.s32.totalorder %s76_s15, %s76_s15 }
   0xb   :  { %p83_p6 = por %p82_p5, %p81_p4 }
   0xd   :  { %p84_p7 = pnand %p83_p6, %p77_p3 }
   0xf   :  { %87 = shalt.err (!%p84_p7)
}
  0x10   :  { %17 = dma.hbm_to_vmem [thread:$0]  %s150_s0, 256, %s15_s7, [#allocation3]  }
  0x11   :  { %110 = dma.done.wait [#allocation3], 256  }
  0x12   :  { %111 = vsyncadd [#allocation3], 4294967040  ;;  %v21_v0 = vld [vmem:[#allocation2] sm:$0xff]  ;;  %v22_v1 = vld [vmem:[#allocation2 + $0x8] sm:$0xff]  ;;  %s115_s18 = smov [#allocation5]  }
  0x13   :  { %v54_v2 = vmul.f32 -1.442695, %v21_v0  ;;  %v55_v3 = vmul.f32 -1.442695, %v22_v1  ;;  %s45_s19 = sshll.u32 %s115_s18, 4  ;;  %s46_s19 = int_to_ptr.vmem [resolvable:$true] %s45_s19 }
  0x14   :  { %s88_s0 = scalar_lea.vmem %s46_s19, 256  ;;  %p93_p9 = scmp.lt.s32.totalorder %s46_s19, %s46_s19 }
  0x15   :  { %58 = vpow2.f32 %v54_v2  ;;  %p89_p8 = scmp.ne.s32.totalorder %s46_s19, %s88_s0  ;;  %p94_p10 = scmp.lt.s32.totalorder %s88_s0, %s88_s0 }
  0x16   :  { %60 = vpow2.f32 %v55_v3 }
  0x17   :  { %p95_p11 = por %p94_p10, %p93_p9 }
  0x19   :  { %p96_p12 = pnand %p95_p11, %p89_p8 }
  0x1f   :  { %v59_v4 = vpop.eup %58 }
  0x20   :  { %v61_v5 = vpop.eup %60  ;;  %v29_v6 = vadd.f32 1.0, %v59_v4 }
  0x21   :  { %v30_v7 = vadd.f32 1.0, %v61_v5 }
  0x22   :  { %62 = vrcp.f32 %v29_v6 }
  0x23   :  { %64 = vrcp.f32 %v30_v7 }
  0x2c   :  { %v63_v8 = vpop.eup %62 }
  0x2d   :  { %v65_v9 = vpop.eup %64  ;;  %v35_v10 = vmul.f32 %v63_v8, %v21_v0 }
  0x2e   :  { %v36_v11 = vmul.f32 %v65_v9, %v22_v1 }
  0x2f   :  { %37 = vst [vmem:[#allocation5] sm:$0xff] %v35_v10 }
  0x30   :  { %38 = vst [vmem:[#allocation5 + $0x8] sm:$0xff] %v36_v11 }
  0x31   :  { %99 = shalt.err (!%p96_p12)
}
  0x32   :  { %s100_s22 = scalar_lea.hbm %s151_s1, 256 }
  0x33   :  { %p101_p13 = scmp.ne.s32.totalorder %s151_s1, %s100_s22  ;;  %p104_p0 = scmp.lt.u32.totalorder %s100_s22, %s151_s1 }
  0x35   :  { %p106_p1 = pnand %p104_p0, %p101_p13 }
  0x37   :  { %109 = shalt.err (!%p106_p1)
}
  0x38   :  { %48 = dma.vmem_to_hbm [thread:$0]  %s46_s19, 256, %s151_s1, [#allocation4]  }
  0x39   :  { %112 = dma.done.wait [#allocation4], 256  }
  0x3a   :  { %113 = vsyncadd [#allocation4], 4294967040 }
  0x3b   :  { %52 = vsyncpa [#allocation3], 1 }
  0x3c   :  { %53 = vsyncpa [#allocation4], 1 }

</bundles_post_ra>
